<compile_context>
chip_gen: v7x
topology: tpu7x:2x2x1
jax: 0.10.0
libtpu: 0.0.40
codegen_flags: <defaults>
</compile_context>

<pallas_src>
import jax
import jax.numpy as jnp
from jax.experimental import pallas as pl
from jax.experimental.pallas import tpu as pltpu  # noqa: F401  (TPU backend)

_SQRT_HALF = 0.7071067811865476          # 1/sqrt(2)
_SQRT_2_OVER_PI = 0.7978845608028654     # sqrt(2/pi)


def _fused_kernel(x_ref, y_ref, z_ref, w_ref,
                  ox_ref, oy_ref, oz_ref, ow_ref):
    """Single fused body: exact GELU on x/y/z, tanh-approx GELU on w."""

    def exact(in_ref, out_ref):
        v = in_ref[...] * 2.0 - 1.0
        out_ref[...] = (0.5 * v * (1.0 + jax.lax.erf(v * _SQRT_HALF))).astype(
            out_ref.dtype)

    def tanh_approx(in_ref, out_ref):
        v = in_ref[...] * 2.0 - 1.0
        inner = _SQRT_2_OVER_PI * (v + 0.044715 * v * v * v)
        out_ref[...] = (0.5 * v * (1.0 + jnp.tanh(inner))).astype(out_ref.dtype)

    exact(x_ref, ox_ref)
    exact(y_ref, oy_ref)
    exact(z_ref, oz_ref)
    tanh_approx(w_ref, ow_ref)      # torch approximate='tanh' branch


def _to_2d(t):
    """Collapse leading dims; keep last dim. Contiguous reshape == free."""
    if t.ndim == 0:
        return t.reshape(1, 1)
    if t.ndim == 1:
        return t.reshape(1, t.shape[0])
    return t.reshape(-1, t.shape[-1])


@jax.jit
def model_forward(x, y, z, w):
    originals = (x, y, z, w)
    ins = [_to_2d(t) for t in originals]

    out_shape = tuple(jax.ShapeDtypeStruct(t.shape, t.dtype) for t in ins)
    # Full-array blocks: (8,128) divisibility waived when block == array dims.
    in_specs = [pl.BlockSpec(t.shape, lambda: (0, 0)) for t in ins]
    out_specs = tuple(pl.BlockSpec(t.shape, lambda: (0, 0)) for t in ins)

    outs = pl.pallas_call(
        _fused_kernel,
        out_shape=out_shape,
        in_specs=in_specs,
        out_specs=out_specs,
    )(*ins)

    return tuple(o.reshape(orig.shape) for o, orig in zip(outs, originals))


def _ref_forward(x, y, z, w):
    def exact(t):
        t = t * 2 - 1
        return 0.5 * t * (1.0 + jax.lax.erf(t * _SQRT_HALF))

    def tanh_approx(t):
        t = t * 2 - 1
        return 0.5 * t * (1.0 + jnp.tanh(_SQRT_2_OVER_PI * (t + 0.044715 * t ** 3)))

    return exact(x), exact(y), exact(z), tanh_approx(w)


if __name__ == "__main__":
    key = jax.random.PRNGKey(0)
    kx, ky, kz, kw = jax.random.split(key, 4)
    # shapes consistent with the pnnx test inputs (rank 1..4 tensors)
    x = jax.random.uniform(kx, (16,), dtype=jnp.float32)
    y = jax.random.uniform(ky, (2, 16), dtype=jnp.float32)
    z = jax.random.uniform(kz, (3, 12, 16), dtype=jnp.float32)
    w = jax.random.uniform(kw, (5, 7, 9, 11), dtype=jnp.float32)

    outs = model_forward(x, y, z, w)
    outs = jax.block_until_ready(outs)

    refs = _ref_forward(x, y, z, w)
    for o, r in zip(outs, refs):
        assert o.shape == r.shape and o.dtype == r.dtype
        assert jnp.max(jnp.abs(o - r)) < 1e-5

    print("KERNEL_OK")
</pallas_src>

<mosaic_0001>
module attributes {stable_mosaic.version = 11 : i64} {
  func.func @_fused_kernel(%arg0: memref<1x16xf32, #tpu.memory_space<vmem>>, %arg1: memref<2x16xf32, #tpu.memory_space<vmem>>, %arg2: memref<36x16xf32, #tpu.memory_space<vmem>>, %arg3: memref<315x11xf32, #tpu.memory_space<vmem>>, %arg4: memref<1x16xf32, #tpu.memory_space<vmem>>, %arg5: memref<2x16xf32, #tpu.memory_space<vmem>>, %arg6: memref<36x16xf32, #tpu.memory_space<vmem>>, %arg7: memref<315x11xf32, #tpu.memory_space<vmem>>) attributes {dimension_semantics = [], scalar_prefetch = 0 : i64, scratch_operands = 0 : i64, tpu.core_type = #tpu.core_type<tc>} {
    %c0 = arith.constant 0 : index
    %c0_0 = arith.constant 0 : index
    %0 = vector.load %arg0[%c0, %c0_0] : memref<1x16xf32, #tpu.memory_space<vmem>>, vector<1x16xf32>
    %cst = arith.constant 2.000000e+00 : f32
    %1 = vector.broadcast %cst : f32 to vector<1x16xf32>
    %2 = arith.mulf %0, %1 : vector<1x16xf32>
    %cst_1 = arith.constant 1.000000e+00 : f32
    %3 = vector.broadcast %cst_1 : f32 to vector<1x16xf32>
    %4 = arith.subf %2, %3 : vector<1x16xf32>
    %cst_2 = arith.constant 5.000000e-01 : f32
    %5 = vector.broadcast %cst_2 : f32 to vector<1x16xf32>
    %6 = arith.mulf %5, %4 : vector<1x16xf32>
    %cst_3 = arith.constant 0.707106769 : f32
    %7 = vector.broadcast %cst_3 : f32 to vector<1x16xf32>
    %8 = arith.mulf %4, %7 : vector<1x16xf32>
    %9 = math.erf %8 : vector<1x16xf32>
    %cst_4 = arith.constant 1.000000e+00 : f32
    %10 = vector.broadcast %cst_4 : f32 to vector<1x16xf32>
    %11 = arith.addf %10, %9 : vector<1x16xf32>
    %12 = arith.mulf %6, %11 : vector<1x16xf32>
    %c0_5 = arith.constant 0 : index
    %c0_6 = arith.constant 0 : index
    %13 = vector.load %arg4[%c0_5, %c0_6] : memref<1x16xf32, #tpu.memory_space<vmem>>, vector<1x16xf32>
    tpu.vector_store %arg4[%c0_5, %c0_6], %12 {strides = array<i32>} : memref<1x16xf32, #tpu.memory_space<vmem>>, vector<1x16xf32>,
    %c0_7 = arith.constant 0 : index
    %c0_8 = arith.constant 0 : index
    %14 = vector.load %arg1[%c0_7, %c0_8] : memref<2x16xf32, #tpu.memory_space<vmem>>, vector<2x16xf32>
    %cst_9 = arith.constant 2.000000e+00 : f32
    %15 = vector.broadcast %cst_9 : f32 to vector<2x16xf32>
    %16 = arith.mulf %14, %15 : vector<2x16xf32>
    %cst_10 = arith.constant 1.000000e+00 : f32
    %17 = vector.broadcast %cst_10 : f32 to vector<2x16xf32>
    %18 = arith.subf %16, %17 : vector<2x16xf32>
    %cst_11 = arith.constant 5.000000e-01 : f32
    %19 = vector.broadcast %cst_11 : f32 to vector<2x16xf32>
    %20 = arith.mulf %19, %18 : vector<2x16xf32>
    %cst_12 = arith.constant 0.707106769 : f32
    %21 = vector.broadcast %cst_12 : f32 to vector<2x16xf32>
    %22 = arith.mulf %18, %21 : vector<2x16xf32>
    %23 = math.erf %22 : vector<2x16xf32>
    %cst_13 = arith.constant 1.000000e+00 : f32
    %24 = vector.broadcast %cst_13 : f32 to vector<2x16xf32>
    %25 = arith.addf %24, %23 : vector<2x16xf32>
    %26 = arith.mulf %20, %25 : vector<2x16xf32>
    %c0_14 = arith.constant 0 : index
    %c0_15 = arith.constant 0 : index
    %27 = vector.load %arg5[%c0_14, %c0_15] : memref<2x16xf32, #tpu.memory_space<vmem>>, vector<2x16xf32>
    tpu.vector_store %arg5[%c0_14, %c0_15], %26 {strides = array<i32>} : memref<2x16xf32, #tpu.memory_space<vmem>>, vector<2x16xf32>,
    %c0_16 = arith.constant 0 : index
    %c0_17 = arith.constant 0 : index
    %28 = vector.load %arg2[%c0_16, %c0_17] : memref<36x16xf32, #tpu.memory_space<vmem>>, vector<36x16xf32>
    %cst_18 = arith.constant 2.000000e+00 : f32
    %29 = vector.broadcast %cst_18 : f32 to vector<36x16xf32>
    %30 = arith.mulf %28, %29 : vector<36x16xf32>
    %cst_19 = arith.constant 1.000000e+00 : f32
    %31 = vector.broadcast %cst_19 : f32 to vector<36x16xf32>
    %32 = arith.subf %30, %31 : vector<36x16xf32>
    %cst_20 = arith.constant 5.000000e-01 : f32
    %33 = vector.broadcast %cst_20 : f32 to vector<36x16xf32>
    %34 = arith.mulf %33, %32 : vector<36x16xf32>
    %cst_21 = arith.constant 0.707106769 : f32
    %35 = vector.broadcast %cst_21 : f32 to vector<36x16xf32>
    %36 = arith.mulf %32, %35 : vector<36x16xf32>
    %37 = math.erf %36 : vector<36x16xf32>
    %cst_22 = arith.constant 1.000000e+00 : f32
    %38 = vector.broadcast %cst_22 : f32 to vector<36x16xf32>
    %39 = arith.addf %38, %37 : vector<36x16xf32>
    %40 = arith.mulf %34, %39 : vector<36x16xf32>
    %c0_23 = arith.constant 0 : index
    %c0_24 = arith.constant 0 : index
    %41 = vector.load %arg6[%c0_23, %c0_24] : memref<36x16xf32, #tpu.memory_space<vmem>>, vector<36x16xf32>
    tpu.vector_store %arg6[%c0_23, %c0_24], %40 {strides = array<i32>} : memref<36x16xf32, #tpu.memory_space<vmem>>, vector<36x16xf32>,
    %c0_25 = arith.constant 0 : index
    %c0_26 = arith.constant 0 : index
    %42 = vector.load %arg3[%c0_25, %c0_26] : memref<315x11xf32, #tpu.memory_space<vmem>>, vector<315x11xf32>
    %cst_27 = arith.constant 2.000000e+00 : f32
    %43 = vector.broadcast %cst_27 : f32 to vector<315x11xf32>
    %44 = arith.mulf %42, %43 : vector<315x11xf32>
    %cst_28 = arith.constant 1.000000e+00 : f32
    %45 = vector.broadcast %cst_28 : f32 to vector<315x11xf32>
    %46 = arith.subf %44, %45 : vector<315x11xf32>
    %cst_29 = arith.constant 4.471500e-02 : f32
    %47 = vector.broadcast %cst_29 : f32 to vector<315x11xf32>
    %48 = arith.mulf %47, %46 : vector<315x11xf32>
    %49 = arith.mulf %48, %46 : vector<315x11xf32>
    %50 = arith.mulf %49, %46 : vector<315x11xf32>
    %51 = arith.addf %46, %50 : vector<315x11xf32>
    %cst_30 = arith.constant 0.797884583 : f32
    %52 = vector.broadcast %cst_30 : f32 to vector<315x11xf32>
    %53 = arith.mulf %52, %51 : vector<315x11xf32>
    %cst_31 = arith.constant 5.000000e-01 : f32
    %54 = vector.broadcast %cst_31 : f32 to vector<315x11xf32>
    %55 = arith.mulf %54, %46 : vector<315x11xf32>
    %56 = math.tanh %53 : vector<315x11xf32>
    %cst_32 = arith.constant 1.000000e+00 : f32
    %57 = vector.broadcast %cst_32 : f32 to vector<315x11xf32>
    %58 = arith.addf %57, %56 : vector<315x11xf32>
    %59 = arith.mulf %55, %58 : vector<315x11xf32>
    %c0_33 = arith.constant 0 : index
    %c0_34 = arith.constant 0 : index
    %60 = vector.load %arg7[%c0_33, %c0_34] : memref<315x11xf32, #tpu.memory_space<vmem>>, vector<315x11xf32>
    tpu.vector_store %arg7[%c0_33, %c0_34], %59 {strides = array<i32>} : memref<315x11xf32, #tpu.memory_space<vmem>>, vector<315x11xf32>,
    return
  }
}

</mosaic_0001>

<bundles_post_ra>
// kernel: model_forward.1
= control target key start
LH: loop header
LB: loop body
LE: loop exit
PB: predicated region body
PF: predicated region fallthrough
CT: control target
= control target key end

     0   :  { %13 = vsyncpa [#allocation3], 0  ;;  %vm31_vm0 = vcmask 122880   ;;  %vm41_vm1 = vcmask 123904   ;;  %vm83_vm2 = vcmask 130048   ;;  %vm88_vm3 = vcmask 125952   ;;  %s1523_s0 = inlined_call_operand.vmem [shape: f32[1,16], index: 0, kind: input, shape index: {}]   ;;  %s1524_s1 = inlined_call_operand.vmem [shape: f32[2,16], index: 1, kind: input, shape index: {}]   ;;  %s1525_s2 = inlined_call_operand.vmem [shape: f32[36,16], index: 2, kind: input, shape index: {}]   ;;  %s1526_s3 = inlined_call_operand.vmem [shape: f32[315,11], index: 3, kind: input, shape index: {}]   ;;  %s1527_s4 = inlined_call_operand.hbm [shape: f32[1,16], index: 4, kind: output, shape index: {0}]   ;;  %s1528_s5 = inlined_call_operand.hbm [shape: f32[2,16], index: 5, kind: output, shape index: {1}]   ;;  %s1529_s6 = inlined_call_operand.vmem [shape: f32[36,16], index: 6, kind: output, shape index: {2}]   ;;  %s1530_s7 = inlined_call_operand.vmem [shape: f32[315,11], index: 7, kind: output, shape index: {3}]  }
   0x1   :  { %v23_v0 = vld [vmem:[%s1523_s0] sm:$0x1]  ;;  %v44_v5 = vld [vmem:[%s1525_s2 + $0x8] sm:$0xff]  ;;  %v45_v6 = vld [vmem:[%s1525_s2 + $0x10] sm:$0xff]  ;;  %s839_s26 = smov [#allocation2]  }
   0x2   :  { %v33_v1 = vld [vmem:[%s1524_s1] sm:$0x3]  ;;  %v24_v2 = vmul.f32 2.0, %v23_v0  ;;  %v49_v8 = vmul.f32 2.0, %v44_v5  ;;  %v50_v9 = vmul.f32 2.0, %v45_v6  ;;  %v46_v10 = vld [vmem:[%s1525_s2 + $0x18] sm:$0xff] }
   0x3   :  { %v34_v3 = vmul.f32 2.0, %v33_v1  ;;  %v43_v4 = vld [vmem:[%s1525_s2] sm:$0xff]  ;;  %v51_v14 = vmul.f32 2.0, %v46_v10  ;;  %v91_v24 = vld [vmem:[%s1526_s3 + $0x8] sm:$0xff]  ;;  %v92_v29 = vld [vmem:[%s1526_s3 + $0x10] sm:$0xff]  ;;  %s618_s27 = sshll.u32 %s839_s26, 4  ;;  %s960_s27 = int_to_ptr.vmem [resolvable:$true] %s618_s27 }
   0x4   :  { %v48_v7 = vmul.f32 2.0, %v43_v4  ;;  %v47_v11 = vld [vmem:[%s1525_s2 + $0x20] sm:$0xf]  ;;  %v648_v12 = vadd.f32 -1.0, %v24_v2  ;;  %v651_v16 = vadd.f32 -1.0, %v49_v8  ;;  %v652_v17 = vadd.f32 -1.0, %v50_v9 }
   0x5   :  { %v649_v13 = vadd.f32 -1.0, %v34_v3  ;;  %v52_v18 = vmul.f32 2.0, %v47_v11  ;;  %v90_v21 = vld [vmem:[%s1526_s3] sm:$0xff]  ;;  %v653_v26 = vadd.f32 -1.0, %v51_v14  ;;  %v93_v30 = vld [vmem:[%s1526_s3 + $0x18] sm:$0xff]  ;;  %v131_v33 = vmul.f32 2.0, %v91_v24 }
   0x6   :  { %v650_v15 = vadd.f32 -1.0, %v48_v7  ;;  %v27_v19 = vmul.f32 0.70710677, %v648_v12  ;;  %v64_v23 = vmul.f32 0.70710677, %v651_v16  ;;  %v130_v28 = vmul.f32 2.0, %v90_v21 }
   0x7   :  { %v37_v20 = vmul.f32 0.70710677, %v649_v13  ;;  %v65_v25 = vmul.f32 0.70710677, %v652_v17  ;;  %v654_v27 = vadd.f32 -1.0, %v52_v18  ;;  %v26_v31 = vmul.f32 0.5, %v648_v12 }
   0x8   :  { %v63_v22 = vmul.f32 0.70710677, %v650_v15  ;;  %697 = verf.f32 %v27_v19  ;;  %v66_v32 = vmul.f32 0.70710677, %v653_v26  ;;  %v94_v34 = vld [vmem:[%s1526_s3 + $0x20] sm:$0xff]  ;;  %v36_v35 = vmul.f32 0.5, %v649_v13 }
   0x9   :  { %699 = verf.f32 %v37_v20  ;;  %v67_v36 = vmul.f32 0.70710677, %v654_v27  ;;  %v917_v37 = vadd.f32 -1.0, %v130_v28  ;;  %v919_v38 = vadd.f32 -1.0, %v131_v33  ;;  %v95_v41 = vld [vmem:[%s1526_s3 + $0x28] sm:$0xff]  ;;  %v96_v52 = vld [vmem:[%s1526_s3 + $0x30] sm:$0xff] }
   0xa   :  { %701 = verf.f32 %v63_v22  ;;  %v132_v39 = vmul.f32 2.0, %v92_v29  ;;  %v133_v40 = vmul.f32 2.0, %v93_v30  ;;  %v58_v42 = vmul.f32 0.5, %v650_v15 }
   0xb   :  { %703 = verf.f32 %v64_v23  ;;  %v210_v43 = vmul.f32 0.044715, %v917_v37  ;;  %v134_v44 = vmul.f32 2.0, %v94_v34  ;;  %v59_v45 = vmul.f32 0.5, %v651_v16 }
   0xc   :  { %705 = verf.f32 %v65_v25  ;;  %v211_v46 = vmul.f32 0.044715, %v919_v38  ;;  %v926_v47 = vadd.f32 -1.0, %v132_v39  ;;  %v929_v49 = vadd.f32 -1.0, %v133_v40 }
   0xd   :  { %707 = verf.f32 %v66_v32  ;;  %v250_v48 = vmul.f32 %v917_v37, %v210_v43  ;;  %v931_v50 = vadd.f32 -1.0, %v134_v44  ;;  %v135_v51 = vmul.f32 2.0, %v95_v41 }
   0xe   :  { %709 = verf.f32 %v67_v36  ;;  %v936_v53 = vmul.f32 0.5, %v652_v17  ;;  %v938_v54 = vmul.f32 0.5, %v653_v26  ;;  %v251_v55 = vmul.f32 %v919_v38, %v211_v46 }
   0xf   :  { %v212_v56 = vmul.f32 0.044715, %v926_v47  ;;  %v942_v57 = vmul.f32 0.5, %v654_v27  ;;  %v290_v58 = vmul.f32 %v917_v37, %v250_v48  ;;  %v213_v59 = vmul.f32 0.044715, %v929_v49 }
  0x10   :  { %v214_v60 = vmul.f32 0.044715, %v931_v50  ;;  %v291_v62 = vmul.f32 %v919_v38, %v251_v55  ;;  %v949_v0 = vadd.f32 -1.0, %v135_v51  ;;  %v951_v1 = vmul.f32 2.0, %v96_v52 }
  0x11   :  { %v252_v63 = vmul.f32 %v926_v47, %v212_v56  ;;  %v330_v4 = vadd.f32 %v917_v37, %v290_v58  ;;  %v253_v5 = vmul.f32 %v929_v49, %v213_v59 }
  0x12   :  { %v698_v61 = vpop.eup %697  ;;  %v254_v6 = vmul.f32 %v931_v50, %v214_v60  ;;  %v331_v9 = vadd.f32 %v919_v38, %v291_v62  ;;  %v215_v11 = vmul.f32 0.044715, %v949_v0 }
  0x13   :  { %v700_v2 = vpop.eup %699  ;;  %v29_v3 = vadd.f32 1.0, %v698_v61  ;;  %v292_v10 = vmul.f32 %v926_v47, %v252_v63  ;;  %v370_v15 = vmul.f32 0.7978846, %v330_v4  ;;  %v293_v16 = vmul.f32 %v929_v49, %v253_v5 }
  0x14   :  { %v702_v7 = vpop.eup %701  ;;  %v39_v8 = vadd.f32 1.0, %v700_v2  ;;  %v371_v20 = vmul.f32 0.7978846, %v331_v9 }
  0x15   :  { %v704_v12 = vpop.eup %703  ;;  %v30_v13 = vmul.f32 %v29_v3, %v26_v31  ;;  %v73_v14 = vadd.f32 1.0, %v702_v7  ;;  %v332_v21 = vadd.f32 %v926_v47, %v292_v10  ;;  %711 = vtanh.f32 %v370_v15 }
  0x16   :  { %v706_v17 = vpop.eup %705  ;;  %v40_v18 = vmul.f32 %v39_v8, %v36_v35  ;;  %v74_v19 = vadd.f32 1.0, %v704_v12  ;;  %v333_v25 = vadd.f32 %v929_v49, %v293_v16 }
  0x17   :  { %v708_v22 = vpop.eup %707  ;;  %32 = vst.msk [vmem:[#allocation2] sm:$0x1] %vm31_vm0, %v30_v13  ;;  %v78_v23 = vmul.f32 %v73_v14, %v58_v42  ;;  %v75_v24 = vadd.f32 1.0, %v706_v17 }
  0x18   :  { %14 = vsyncpa [#allocation5], 0  ;;  %s840_s28 = smov [#allocation4]   ;;  %v710_v26 = vpop.eup %709  ;;  %42 = vst.msk [vmem:[#allocation4] sm:$0x3] %vm41_vm1, %v40_v18  ;;  %v79_v27 = vmul.f32 %v74_v19, %v59_v45  ;;  %v76_v28 = vadd.f32 1.0, %v708_v22  ;;  %713 = vtanh.f32 %v371_v20  ;;  %p796_p1 = scmp.lt.s32.totalorder %s960_s27, %s960_s27 }
  0x19   :  { %s628_s29 = sshll.u32 %s840_s28, 4  ;;  %v372_v29 = vmul.f32 0.7978846, %v332_v21  ;;  %s791_s30 = scalar_lea.vmem %s960_s27, 16  ;;  %s629_s29 = int_to_ptr.vmem [resolvable:$true] %s628_s29 }
  0x1a   :  { %p792_p0 = scmp.ne.s32.totalorder %s960_s27, %s791_s30  ;;  %s795_s8 = scalar_lea.vmem %s960_s27, 32 }
  0x1b   :  { %p797_p2 = scmp.lt.s32.totalorder %s795_s8, %s791_s30 }
  0x1d   :  { %p798_p3 = por %p797_p2, %p796_p1 }
  0x1f   :  { %p799_p4 = pnand %p798_p3, %p792_p0 }
  0x21   :  { %802 = shalt.err (!%p799_p4)
}
  0x22   :  { %s803_s0 = scalar_lea.hbm %s1527_s4, 16 }
  0x23   :  { %p804_p5 = scmp.ne.s32.totalorder %s1527_s4, %s803_s0  ;;  %p807_p6 = scmp.lt.u32.totalorder %s803_s0, %s1527_s4 }
  0x25   :  { %p809_p7 = pnand %p807_p6, %p804_p5 }
  0x27   :  { %812 = shalt.err (!%p809_p7)
}
  0x28   :  { %621 = dma.vmem_to_hbm [thread:$0]  %s960_s27, 16, %s1527_s4, [#allocation3]   ;;  %84 = vst.msk [vmem:[%s1529_s6] sm:$0xff] %vm83_vm2, %v78_v23  ;;  %v80_v30 = vmul.f32 %v75_v24, %v936_v53  ;;  %v77_v31 = vadd.f32 1.0, %v710_v26  ;;  %v373_v32 = vmul.f32 0.7978846, %v333_v25  ;;  %v294_v33 = vmul.f32 %v931_v50, %v254_v6 }
  0x29   :  { %v97_v34 = vld [vmem:[%s1526_s3 + $0x38] sm:$0xff]  ;;  %v98_v35 = vld [vmem:[%s1526_s3 + $0x40] sm:$0xff]  ;;  %v99_v36 = vld [vmem:[%s1526_s3 + $0x48] sm:$0xff]  ;;  %85 = vst.msk [vmem:[%s1529_s6 + $0x8] sm:$0xff] %vm83_vm2, %v79_v27  ;;  %v81_v39 = vmul.f32 %v76_v28, %v938_v54  ;;  %v410_v40 = vmul.f32 0.5, %v917_v37  ;;  %715 = vtanh.f32 %v372_v29  ;;  %v255_v41 = vmul.f32 %v949_v0, %v215_v11  ;;  %s813_s26 = scalar_lea.vmem %s629_s29, 32  ;;  %p818_p9 = scmp.lt.s32.totalorder %s629_s29, %s629_s29 }
  0x2a   :  { %v100_v42 = vld [vmem:[%s1526_s3 + $0x50] sm:$0xff]  ;;  %p814_p8 = scmp.ne.s32.totalorder %s629_s29, %s813_s26  ;;  %p819_p10 = scmp.lt.s32.totalorder %s813_s26, %s813_s26 }
  0x2c   :  { %p820_p11 = por %p819_p10, %p818_p9 }
  0x2e   :  { %p821_p12 = pnand %p820_p11, %p814_p8 }
  0x30   :  { %824 = shalt.err (!%p821_p12)
}
  0x31   :  { %s825_s30 = scalar_lea.hbm %s1528_s5, 32 }
  0x32   :  { %p826_p13 = scmp.ne.s32.totalorder %s1528_s5, %s825_s30  ;;  %p829_p0 = scmp.lt.u32.totalorder %s825_s30, %s1528_s5 }
  0x34   :  { %p831_p1 = pnand %p829_p0, %p826_p13 }
  0x36   :  { %834 = shalt.err (!%p831_p1)
}
  0x37   :  { %631 = dma.vmem_to_hbm [thread:$0]  %s629_s29, 32, %s1528_s5, [#allocation5]   ;;  %86 = vst.msk [vmem:[%s1529_s6 + $0x10] sm:$0xff] %vm83_vm2, %v80_v30  ;;  %v82_v37 = vmul.f32 %v77_v31, %v942_v57  ;;  %vm570_vm4 = vcmask 89088   ;;  %717 = vtanh.f32 %v373_v32  ;;  %v334_v43 = vadd.f32 %v931_v50, %v294_v33  ;;  %87 = vst.msk [vmem:[%s1529_s6 + $0x18] sm:$0xff] %vm83_vm2, %v81_v39  ;;  %v101_v60 = vld [vmem:[%s1526_s3 + $0x58] sm:$0xff]  ;;  %v712_v4 = vpop.eup %711 }
  0x38   :  { %v1028_v44 = vadd.f32 -1.0, %v951_v1  ;;  %v295_v45 = vmul.f32 %v949_v0, %v255_v41  ;;  %v137_v46 = vmul.f32 2.0, %v97_v34  ;;  %v138_v48 = vmul.f32 2.0, %v98_v35  ;;  %v714_v8 = vpop.eup %713  ;;  %v102_v27 = vld [vmem:[%s1526_s3 + $0x60] sm:$0xff]  ;;  %v103_v35 = vld [vmem:[%s1526_s3 + $0x68] sm:$0xff]  ;;  %v105_v39 = vld [vmem:[%s1526_s3 + $0x78] sm:$0xff] }
  0x39   :  { %v139_v51 = vmul.f32 2.0, %v99_v36  ;;  %89 = vst.msk [vmem:[%s1529_s6 + $0x20] sm:$0xf] %vm88_vm3, %v82_v37  ;;  %v411_v52 = vmul.f32 0.5, %v919_v38  ;;  %v374_v53 = vmul.f32 0.7978846, %v334_v43  ;;  %v716_v14 = vpop.eup %715 }
  0x3a   :  { %v216_v54 = vmul.f32 0.044715, %v1028_v44  ;;  %v140_v55 = vmul.f32 2.0, %v100_v42  ;;  %v335_v56 = vadd.f32 %v949_v0, %v295_v45  ;;  %v1042_v57 = vadd.f32 -1.0, %v137_v46  ;;  %v104_v36 = vld [vmem:[%s1526_s3 + $0x70] sm:$0xff] }
  0x3b   :  { %v1044_v58 = vadd.f32 -1.0, %v138_v48  ;;  %v1046_v59 = vadd.f32 -1.0, %v139_v51  ;;  %v412_v61 = vmul.f32 0.5, %v926_v47  ;;  %719 = vtanh.f32 %v374_v53 }
  0x3c   :  { %v256_v38 = vmul.f32 %v1028_v44, %v216_v54  ;;  %v1053_v62 = vadd.f32 -1.0, %v140_v55  ;;  %v413_v63 = vmul.f32 0.5, %v929_v49  ;;  %v414_v1 = vmul.f32 0.5, %v931_v50 }
  0x3d   :  { %v375_v2 = vmul.f32 0.7978846, %v335_v56  ;;  %v217_v3 = vmul.f32 0.044715, %v1042_v57  ;;  %v218_v6 = vmul.f32 0.044715, %v1044_v58 }
  0x3e   :  { %v296_v5 = vmul.f32 %v1028_v44, %v256_v38  ;;  %v219_v7 = vmul.f32 0.044715, %v1046_v59  ;;  %v141_v47 = vmul.f32 2.0, %v101_v60  ;;  %v490_v9 = vadd.f32 1.0, %v712_v4  ;;  %v106_v60 = vld [vmem:[%s1526_s3 + $0x80] sm:$0xff] }
  0x3f   :  { %721 = vtanh.f32 %v375_v2  ;;  %v257_v10 = vmul.f32 %v1042_v57, %v217_v3  ;;  %v220_v49 = vmul.f32 0.044715, %v1053_v62  ;;  %v491_v11 = vadd.f32 1.0, %v714_v8 }
  0x40   :  { %v336_v50 = vadd.f32 %v1028_v44, %v296_v5  ;;  %v258_v12 = vmul.f32 %v1044_v58, %v218_v6  ;;  %v259_v13 = vmul.f32 %v1046_v59, %v219_v7  ;;  %v530_v15 = vmul.f32 %v490_v9, %v410_v40 }
  0x41   :  { %v415_v16 = vmul.f32 0.5, %v949_v0  ;;  %v297_v17 = vmul.f32 %v1042_v57, %v257_v10  ;;  %v260_v18 = vmul.f32 %v1053_v62, %v220_v49  ;;  %v718_v19 = vpop.eup %717  ;;  %v531_v20 = vmul.f32 %v491_v11, %v411_v52 }
  0x42   :  { %v492_v21 = vadd.f32 1.0, %v716_v14  ;;  %v376_v22 = vmul.f32 0.7978846, %v336_v50  ;;  %v298_v23 = vmul.f32 %v1044_v58, %v258_v12  ;;  %571 = vst.msk [vmem:[%s1530_s7] sm:$0xff] %vm570_vm4, %v530_v15  ;;  %v493_v24 = vadd.f32 1.0, %v718_v19 }
  0x43   :  { %v337_v25 = vadd.f32 %v1042_v57, %v297_v17  ;;  %v299_v0 = vmul.f32 %v1046_v59, %v259_v13  ;;  %v300_v26 = vmul.f32 %v1053_v62, %v260_v18  ;;  %572 = vst.msk [vmem:[%s1530_s7 + $0x8] sm:$0xff] %vm570_vm4, %v531_v20  ;;  %v666_v30 = vadd.f32 -1.0, %v141_v47 }
  0x44   :  { %v532_v28 = vmul.f32 %v492_v21, %v412_v61  ;;  %723 = vtanh.f32 %v376_v22  ;;  %v338_v29 = vadd.f32 %v1044_v58, %v298_v23  ;;  %v533_v31 = vmul.f32 %v493_v24, %v413_v63 }
  0x45   :  { %v377_v32 = vmul.f32 0.7978846, %v337_v25  ;;  %v339_v33 = vadd.f32 %v1046_v59, %v299_v0  ;;  %v340_v34 = vadd.f32 %v1053_v62, %v300_v26  ;;  %v720_v40 = vpop.eup %719  ;;  %v416_v41 = vmul.f32 0.5, %v1028_v44 }
  0x46   :  { %573 = vst.msk [vmem:[%s1530_s7 + $0x10] sm:$0xff] %vm570_vm4, %v532_v28  ;;  %v378_v42 = vmul.f32 0.7978846, %v338_v29  ;;  %v221_v37 = vmul.f32 0.044715, %v666_v30  ;;  %v142_v43 = vmul.f32 2.0, %v102_v27 }
  0x47   :  { %574 = vst.msk [vmem:[%s1530_s7 + $0x18] sm:$0xff] %vm570_vm4, %v533_v31  ;;  %v494_v45 = vadd.f32 1.0, %v720_v40  ;;  %725 = vtanh.f32 %v377_v32  ;;  %v379_v46 = vmul.f32 0.7978846, %v339_v33  ;;  %v380_v48 = vmul.f32 0.7978846, %v340_v34 }
  0x48   :  { %727 = vtanh.f32 %v378_v42  ;;  %v261_v51 = vmul.f32 %v666_v30, %v221_v37  ;;  %v1105_v52 = vadd.f32 -1.0, %v142_v43  ;;  %v143_v53 = vmul.f32 2.0, %v103_v35  ;;  %v109_v40 = vld [vmem:[%s1526_s3 + $0x98] sm:$0xff] }
  0x49   :  { %v722_v54 = vpop.eup %721  ;;  %v534_v55 = vmul.f32 %v494_v45, %v414_v1  ;;  %729 = vtanh.f32 %v379_v46  ;;  %v144_v44 = vmul.f32 2.0, %v104_v36  ;;  %v145_v56 = vmul.f32 2.0, %v105_v39  ;;  %v108_v39 = vld [vmem:[%s1526_s3 + $0x90] sm:$0xff] }
  0x4a   :  { %v495_v61 = vadd.f32 1.0, %v722_v54  ;;  %731 = vtanh.f32 %v380_v48  ;;  %v301_v38 = vmul.f32 %v666_v30, %v261_v51  ;;  %v222_v63 = vmul.f32 0.044715, %v1105_v52 }
  0x4b   :  { %575 = vst.msk [vmem:[%s1530_s7 + $0x20] sm:$0xff] %vm570_vm4, %v534_v55  ;;  %v417_v2 = vmul.f32 0.5, %v1042_v57  ;;  %v1116_v1 = vadd.f32 -1.0, %v143_v53  ;;  %v1118_v3 = vadd.f32 -1.0, %v144_v44  ;;  %v1120_v4 = vadd.f32 -1.0, %v145_v56  ;;  %v110_v53 = vld [vmem:[%s1526_s3 + $0xa0] sm:$0xff] }
  0x4c   :  { %v535_v5 = vmul.f32 %v495_v61, %v415_v16  ;;  %v341_v6 = vadd.f32 %v666_v30, %v301_v38  ;;  %v262_v7 = vmul.f32 %v1105_v52, %v222_v63  ;;  %v146_v47 = vmul.f32 2.0, %v106_v60  ;;  %v107_v16 = vld [vmem:[%s1526_s3 + $0x88] sm:$0xff]  ;;  %v112_v60 = vld [vmem:[%s1526_s3 + $0xb0] sm:$0xff] }
  0x4d   :  { %v418_v8 = vmul.f32 0.5, %v1044_v58  ;;  %v419_v9 = vmul.f32 0.5, %v1046_v59  ;;  %v223_v10 = vmul.f32 0.044715, %v1116_v1  ;;  %v224_v49 = vmul.f32 0.044715, %v1118_v3 }
  0x4e   :  { %v724_v57 = vpop.eup %723  ;;  %576 = vst.msk [vmem:[%s1530_s7 + $0x28] sm:$0xff] %vm570_vm4, %v535_v5  ;;  %v420_v11 = vmul.f32 0.5, %v1053_v62  ;;  %v381_v50 = vmul.f32 0.7978846, %v341_v6  ;;  %v302_v12 = vmul.f32 %v1105_v52, %v262_v7  ;;  %v225_v13 = vmul.f32 0.044715, %v1120_v4 }
  0x4f   :  { %v496_v58 = vadd.f32 1.0, %v724_v57  ;;  %v263_v59 = vmul.f32 %v1116_v1, %v223_v10  ;;  %v264_v14 = vmul.f32 %v1118_v3, %v224_v49  ;;  %v1136_v15 = vadd.f32 -1.0, %v146_v47  ;;  %v111_v56 = vld [vmem:[%s1526_s3 + $0xa8] sm:$0xff] }
  0x50   :  { %v1141_v17 = vmul.f32 0.5, %v666_v30  ;;  %733 = vtanh.f32 %v381_v50  ;;  %v342_v62 = vadd.f32 %v1105_v52, %v302_v12  ;;  %v265_v18 = vmul.f32 %v1120_v4, %v225_v13 }
  0x51   :  { %v726_v19 = vpop.eup %725  ;;  %v536_v20 = vmul.f32 %v496_v58, %v416_v41  ;;  %v303_v21 = vmul.f32 %v1116_v1, %v263_v59  ;;  %v304_v22 = vmul.f32 %v1118_v3, %v264_v14  ;;  %v226_v23 = vmul.f32 0.044715, %v1136_v15 }
  0x52   :  { %v728_v24 = vpop.eup %727  ;;  %v497_v25 = vadd.f32 1.0, %v726_v19  ;;  %v382_v0 = vmul.f32 0.7978846, %v342_v62  ;;  %v305_v26 = vmul.f32 %v1120_v4, %v265_v18  ;;  %v147_v27 = vmul.f32 2.0, %v107_v16 }
  0x53   :  { %v730_v28 = vpop.eup %729  ;;  %577 = vst.msk [vmem:[%s1530_s7 + $0x30] sm:$0xff] %vm570_vm4, %v536_v20  ;;  %v498_v29 = vadd.f32 1.0, %v728_v24  ;;  %v343_v30 = vadd.f32 %v1116_v1, %v303_v21  ;;  %v344_v31 = vadd.f32 %v1118_v3, %v304_v22  ;;  %v266_v32 = vmul.f32 %v1136_v15, %v226_v23 }
  0x54   :  { %v732_v33 = vpop.eup %731  ;;  %v537_v34 = vmul.f32 %v497_v25, %v417_v2  ;;  %v499_v35 = vadd.f32 1.0, %v730_v28  ;;  %735 = vtanh.f32 %v382_v0  ;;  %v345_v36 = vadd.f32 %v1120_v4, %v305_v26 }
  0x55   :  { %v538_v41 = vmul.f32 %v498_v29, %v418_v8  ;;  %v500_v42 = vadd.f32 1.0, %v732_v33  ;;  %v383_v37 = vmul.f32 0.7978846, %v343_v30  ;;  %v384_v43 = vmul.f32 0.7978846, %v344_v31 }
  0x56   :  { %578 = vst.msk [vmem:[%s1530_s7 + $0x38] sm:$0xff] %vm570_vm4, %v537_v34  ;;  %v539_v45 = vmul.f32 %v499_v35, %v419_v9  ;;  %v385_v46 = vmul.f32 0.7978846, %v345_v36  ;;  %v306_v48 = vmul.f32 %v1136_v15, %v266_v32  ;;  %v1168_v51 = vadd.f32 -1.0, %v147_v27 }
  0x57   :  { %579 = vst.msk [vmem:[%s1530_s7 + $0x40] sm:$0xff] %vm570_vm4, %v538_v41  ;;  %v540_v54 = vmul.f32 %v500_v42, %v420_v11  ;;  %737 = vtanh.f32 %v383_v37  ;;  %v148_v55 = vmul.f32 2.0, %v108_v39  ;;  %v149_v44 = vmul.f32 2.0, %v109_v40 }
  0x58   :  { %580 = vst.msk [vmem:[%s1530_s7 + $0x48] sm:$0xff] %vm570_vm4, %v539_v45  ;;  %v422_v61 = vmul.f32 0.5, %v1105_v52  ;;  %739 = vtanh.f32 %v384_v43  ;;  %v346_v38 = vadd.f32 %v1136_v15, %v306_v48  ;;  %v227_v63 = vmul.f32 0.044715, %v1168_v51  ;;  %v113_v43 = vld [vmem:[%s1526_s3 + $0xb8] sm:$0xff]  ;;  %v114_v45 = vld [vmem:[%s1526_s3 + $0xc0] sm:$0xff] }
  0x59   :  { %581 = vst.msk [vmem:[%s1530_s7 + $0x50] sm:$0xff] %vm570_vm4, %v540_v54  ;;  %741 = vtanh.f32 %v385_v46  ;;  %v1194_v2 = vadd.f32 -1.0, %v148_v55  ;;  %v1196_v5 = vadd.f32 -1.0, %v149_v44  ;;  %v150_v6 = vmul.f32 2.0, %v110_v53  ;;  %v115_v54 = vld [vmem:[%s1526_s3 + $0xc8] sm:$0xff]  ;;  %v116_v55 = vld [vmem:[%s1526_s3 + $0xd0] sm:$0xff] }
  0x5a   :  { %v734_v7 = vpop.eup %733  ;;  %v386_v47 = vmul.f32 0.7978846, %v346_v38  ;;  %v267_v52 = vmul.f32 %v1168_v51, %v227_v63  ;;  %v151_v8 = vmul.f32 2.0, %v111_v56  ;;  %v152_v9 = vmul.f32 2.0, %v112_v60 }
  0x5b   :  { %v501_v10 = vadd.f32 1.0, %v734_v7  ;;  %v423_v49 = vmul.f32 0.5, %v1116_v1  ;;  %v228_v57 = vmul.f32 0.044715, %v1194_v2  ;;  %v229_v11 = vmul.f32 0.044715, %v1196_v5 }
  0x5c   :  { %v424_v50 = vmul.f32 0.5, %v1118_v3  ;;  %743 = vtanh.f32 %v386_v47  ;;  %v307_v12 = vmul.f32 %v1168_v51, %v267_v52  ;;  %v1204_v13 = vadd.f32 -1.0, %v150_v6  ;;  %v117_v7 = vld [vmem:[%s1526_s3 + $0xd8] sm:$0xff] }
  0x5d   :  { %v541_v58 = vmul.f32 %v501_v10, %v1141_v17  ;;  %v268_v59 = vmul.f32 %v1194_v2, %v228_v57  ;;  %v269_v14 = vmul.f32 %v1196_v5, %v229_v11  ;;  %v1209_v16 = vadd.f32 -1.0, %v151_v8 }
  0x5e   :  { %v736_v1 = vpop.eup %735  ;;  %v425_v62 = vmul.f32 0.5, %v1120_v4  ;;  %v347_v18 = vadd.f32 %v1168_v51, %v307_v12  ;;  %v230_v3 = vmul.f32 0.044715, %v1204_v13  ;;  %v1214_v19 = vadd.f32 -1.0, %v152_v9  ;;  %v118_v12 = vld [vmem:[%s1526_s3 + $0xe0] sm:$0xff] }
  0x5f   :  { %582 = vst.msk [vmem:[%s1530_s7 + $0x58] sm:$0xff] %vm570_vm4, %v541_v58  ;;  %v502_v17 = vadd.f32 1.0, %v736_v1  ;;  %v308_v20 = vmul.f32 %v1194_v2, %v268_v59  ;;  %v309_v21 = vmul.f32 %v1196_v5, %v269_v14  ;;  %v231_v22 = vmul.f32 0.044715, %v1209_v16 }
  0x60   :  { %v426_v4 = vmul.f32 0.5, %v1136_v15  ;;  %v387_v23 = vmul.f32 0.7978846, %v347_v18  ;;  %v270_v24 = vmul.f32 %v1204_v13, %v230_v3  ;;  %v232_v25 = vmul.f32 0.044715, %v1214_v19 }
  0x61   :  { %v738_v0 = vpop.eup %737  ;;  %v542_v26 = vmul.f32 %v502_v17, %v422_v61  ;;  %v348_v27 = vadd.f32 %v1194_v2, %v308_v20  ;;  %v349_v28 = vadd.f32 %v1196_v5, %v309_v21  ;;  %v271_v29 = vmul.f32 %v1209_v16, %v231_v22 }
  0x62   :  { %v740_v30 = vpop.eup %739  ;;  %v503_v31 = vadd.f32 1.0, %v738_v0  ;;  %745 = vtanh.f32 %v387_v23  ;;  %v310_v32 = vmul.f32 %v1204_v13, %v270_v24  ;;  %v272_v15 = vmul.f32 %v1214_v19, %v232_v25 }
  0x63   :  { %v742_v33 = vpop.eup %741  ;;  %583 = vst.msk [vmem:[%s1530_s7 + $0x60] sm:$0xff] %vm570_vm4, %v542_v26  ;;  %v504_v34 = vadd.f32 1.0, %v740_v30  ;;  %v388_v35 = vmul.f32 0.7978846, %v348_v27  ;;  %v389_v36 = vmul.f32 0.7978846, %v349_v28  ;;  %v311_v39 = vmul.f32 %v1209_v16, %v271_v29 }
  0x64   :  { %v543_v40 = vmul.f32 %v503_v31, %v423_v49  ;;  %v505_v41 = vadd.f32 1.0, %v742_v33  ;;  %v350_v42 = vadd.f32 %v1204_v13, %v310_v32  ;;  %v312_v37 = vmul.f32 %v1214_v19, %v272_v15 }
  0x65   :  { %v544_v46 = vmul.f32 %v504_v34, %v424_v50  ;;  %v427_v48 = vmul.f32 0.5, %v1168_v51  ;;  %747 = vtanh.f32 %v388_v35  ;;  %v351_v53 = vadd.f32 %v1209_v16, %v311_v39 }
  0x66   :  { %v744_v44 = vpop.eup %743  ;;  %584 = vst.msk [vmem:[%s1530_s7 + $0x68] sm:$0xff] %vm570_vm4, %v543_v40  ;;  %v545_v56 = vmul.f32 %v505_v41, %v425_v62  ;;  %749 = vtanh.f32 %v389_v36  ;;  %v390_v51 = vmul.f32 0.7978846, %v350_v42  ;;  %v352_v60 = vadd.f32 %v1214_v19, %v312_v37 }
  0x67   :  { %585 = vst.msk [vmem:[%s1530_s7 + $0x70] sm:$0xff] %vm570_vm4, %v544_v46  ;;  %v506_v61 = vadd.f32 1.0, %v744_v44  ;;  %v391_v38 = vmul.f32 0.7978846, %v351_v53  ;;  %v153_v63 = vmul.f32 2.0, %v113_v43  ;;  %v154_v6 = vmul.f32 2.0, %v114_v45 }
  0x68   :  { %586 = vst.msk [vmem:[%s1530_s7 + $0x78] sm:$0xff] %vm570_vm4, %v545_v56  ;;  %751 = vtanh.f32 %v390_v51  ;;  %v392_v47 = vmul.f32 0.7978846, %v352_v60  ;;  %v155_v52 = vmul.f32 2.0, %v115_v54  ;;  %v156_v8 = vmul.f32 2.0, %v116_v55 }
  0x69   :  { %v546_v9 = vmul.f32 %v506_v61, %v426_v4  ;;  %753 = vtanh.f32 %v391_v38  ;;  %v1268_v10 = vadd.f32 -1.0, %v153_v63  ;;  %v1270_v49 = vadd.f32 -1.0, %v154_v6  ;;  %v120_v38 = vld [vmem:[%s1526_s3 + $0xf0] sm:$0xff]  ;;  %v121_v63 = vld [vmem:[%s1526_s3 + $0xf8] sm:$0xff] }
  0x6a   :  { %755 = vtanh.f32 %v392_v47  ;;  %v1272_v57 = vadd.f32 -1.0, %v155_v52  ;;  %v1274_v11 = vadd.f32 -1.0, %v156_v8  ;;  %v157_v50 = vmul.f32 2.0, %v117_v7  ;;  %v122_v47 = vld [vmem:[%s1526_s3 + $0x100] sm:$0xff] }
  0x6b   :  { %587 = vst.msk [vmem:[%s1530_s7 + $0x80] sm:$0xff] %vm570_vm4, %v546_v9  ;;  %v428_v58 = vmul.f32 0.5, %v1194_v2  ;;  %v429_v59 = vmul.f32 0.5, %v1196_v5  ;;  %v233_v14 = vmul.f32 0.044715, %v1268_v10  ;;  %v430_v18 = vmul.f32 0.5, %v1204_v13 }
  0x6c   :  { %v234_v1 = vmul.f32 0.044715, %v1270_v49  ;;  %v746_v62 = vpop.eup %745  ;;  %v431_v3 = vmul.f32 0.5, %v1209_v16  ;;  %v235_v17 = vmul.f32 0.044715, %v1272_v57  ;;  %v1293_v4 = vadd.f32 -1.0, %v157_v50 }
  0x6d   :  { %v236_v20 = vmul.f32 0.044715, %v1274_v11  ;;  %v507_v21 = vadd.f32 1.0, %v746_v62  ;;  %v273_v22 = vmul.f32 %v1268_v10, %v233_v14  ;;  %v119_v5 = vld [vmem:[%s1526_s3 + $0xe8] sm:$0xff]  ;;  %v432_v23 = vmul.f32 0.5, %v1214_v19  ;;  %v124_v14 = vld [vmem:[%s1526_s3 + $0x110] sm:$0xff] }
  0x6e   :  { %v274_v2 = vmul.f32 %v1270_v49, %v234_v1  ;;  %v275_v13 = vmul.f32 %v1272_v57, %v235_v17  ;;  %v158_v24 = vmul.f32 2.0, %v118_v12  ;;  %v237_v28 = vmul.f32 0.044715, %v1293_v4  ;;  %v123_v50 = vld [vmem:[%s1526_s3 + $0x108] sm:$0xff] }
  0x6f   :  { %v276_v16 = vmul.f32 %v1274_v11, %v236_v20  ;;  %v748_v25 = vpop.eup %747  ;;  %v547_v0 = vmul.f32 %v507_v21, %v427_v48  ;;  %v313_v26 = vmul.f32 %v1268_v10, %v273_v22  ;;  %v159_v19 = vmul.f32 2.0, %v119_v5 }
  0x70   :  { %v314_v27 = vmul.f32 %v1270_v49, %v274_v2  ;;  %v750_v29 = vpop.eup %749  ;;  %v508_v30 = vadd.f32 1.0, %v748_v25  ;;  %v315_v31 = vmul.f32 %v1272_v57, %v275_v13  ;;  %v277_v35 = vmul.f32 %v1293_v4, %v237_v28 }
  0x71   :  { %v316_v32 = vmul.f32 %v1274_v11, %v276_v16  ;;  %588 = vst.msk [vmem:[%s1530_s7 + $0x88] sm:$0xff] %vm570_vm4, %v547_v0  ;;  %v509_v15 = vadd.f32 1.0, %v750_v29  ;;  %v353_v33 = vadd.f32 %v1268_v10, %v313_v26  ;;  %v1315_v42 = vadd.f32 -1.0, %v158_v24 }
  0x72   :  { %v354_v34 = vadd.f32 %v1270_v49, %v314_v27  ;;  %v752_v36 = vpop.eup %751  ;;  %v548_v39 = vmul.f32 %v508_v30, %v428_v58  ;;  %v355_v40 = vadd.f32 %v1272_v57, %v315_v31  ;;  %v317_v56 = vmul.f32 %v1293_v4, %v277_v35 }
  0x73   :  { %v356_v41 = vadd.f32 %v1274_v11, %v316_v32  ;;  %v754_v37 = vpop.eup %753  ;;  %v549_v43 = vmul.f32 %v509_v15, %v429_v59  ;;  %v510_v45 = vadd.f32 1.0, %v752_v36  ;;  %v393_v46 = vmul.f32 0.7978846, %v353_v33 }
  0x74   :  { %v394_v48 = vmul.f32 0.7978846, %v354_v34  ;;  %v756_v53 = vpop.eup %755  ;;  %589 = vst.msk [vmem:[%s1530_s7 + $0x90] sm:$0xff] %vm570_vm4, %v548_v39  ;;  %v511_v54 = vadd.f32 1.0, %v754_v37  ;;  %v395_v55 = vmul.f32 0.7978846, %v355_v40  ;;  %v357_v7 = vadd.f32 %v1293_v4, %v317_v56 }
  0x75   :  { %v396_v44 = vmul.f32 0.7978846, %v356_v41  ;;  %590 = vst.msk [vmem:[%s1530_s7 + $0x98] sm:$0xff] %vm570_vm4, %v549_v43  ;;  %v550_v51 = vmul.f32 %v510_v45, %v430_v18  ;;  %v512_v60 = vadd.f32 1.0, %v756_v53  ;;  %757 = vtanh.f32 %v393_v46 }
  0x76   :  { %v238_v61 = vmul.f32 0.044715, %v1315_v42  ;;  %v551_v6 = vmul.f32 %v511_v54, %v431_v3  ;;  %759 = vtanh.f32 %v394_v48  ;;  %v1342_v9 = vadd.f32 -1.0, %v159_v19 }
  0x77   :  { %591 = vst.msk [vmem:[%s1530_s7 + $0xa0] sm:$0xff] %vm570_vm4, %v550_v51  ;;  %v552_v52 = vmul.f32 %v512_v60, %v432_v23  ;;  %761 = vtanh.f32 %v395_v55  ;;  %v397_v12 = vmul.f32 0.7978846, %v357_v7  ;;  %v160_v58 = vmul.f32 2.0, %v120_v38 }
  0x78   :  { %v278_v8 = vmul.f32 %v1315_v42, %v238_v61  ;;  %592 = vst.msk [vmem:[%s1530_s7 + $0xa8] sm:$0xff] %vm570_vm4, %v551_v6  ;;  %763 = vtanh.f32 %v396_v44  ;;  %v161_v59 = vmul.f32 2.0, %v121_v63  ;;  %v433_v1 = vmul.f32 0.5, %v1268_v10  ;;  %v126_v63 = vld [vmem:[%s1526_s3 + $0x120] sm:$0xff] }
  0x79   :  { %593 = vst.msk [vmem:[%s1530_s7 + $0xb0] sm:$0xff] %vm570_vm4, %v552_v52  ;;  %v239_v18 = vmul.f32 0.044715, %v1342_v9  ;;  %v162_v3 = vmul.f32 2.0, %v122_v47  ;;  %765 = vtanh.f32 %v397_v12  ;;  %v1361_v17 = vadd.f32 -1.0, %v160_v58  ;;  %v127_v12 = vld [vmem:[%s1526_s3 + $0x128] sm:$0xff] }
  0x7a   :  { %v318_v62 = vmul.f32 %v1315_v42, %v278_v8  ;;  %v1363_v20 = vadd.f32 -1.0, %v161_v59  ;;  %v163_v21 = vmul.f32 2.0, %v123_v50  ;;  %v164_v23 = vmul.f32 2.0, %v124_v14  ;;  %v128_v58 = vld [vmem:[%s1526_s3 + $0x130] sm:$0xff] }
  0x7b   :  { %v279_v2 = vmul.f32 %v1342_v9, %v239_v18  ;;  %v1367_v5 = vadd.f32 -1.0, %v162_v3  ;;  %v434_v10 = vmul.f32 0.5, %v1270_v49  ;;  %v435_v13 = vmul.f32 0.5, %v1272_v57  ;;  %v125_v57 = vld [vmem:[%s1526_s3 + $0x118] sm:$0xff] }
  0x7c   :  { %v358_v22 = vadd.f32 %v1315_v42, %v318_v62  ;;  %v240_v16 = vmul.f32 0.044715, %v1361_v17  ;;  %v241_v24 = vmul.f32 0.044715, %v1363_v20  ;;  %v436_v25 = vmul.f32 0.5, %v1274_v11 }
  0x7d   :  { %v319_v26 = vmul.f32 %v1342_v9, %v279_v2  ;;  %v242_v27 = vmul.f32 0.044715, %v1367_v5  ;;  %v437_v28 = vmul.f32 0.5, %v1293_v4  ;;  %v1379_v49 = vadd.f32 -1.0, %v163_v21  ;;  %v129_v21 = vld [vmem:[%s1526_s3 + $0x138] sm:$0x7] }
  0x7e   :  { %v398_v0 = vmul.f32 0.7978846, %v358_v22  ;;  %v280_v29 = vmul.f32 %v1361_v17, %v240_v16  ;;  %v281_v30 = vmul.f32 %v1363_v20, %v241_v24  ;;  %v1386_v19 = vadd.f32 -1.0, %v164_v23 }
  0x7f   :  { %v758_v31 = vpop.eup %757  ;;  %v359_v11 = vadd.f32 %v1342_v9, %v319_v26  ;;  %v282_v32 = vmul.f32 %v1367_v5, %v242_v27  ;;  %v243_v35 = vmul.f32 0.044715, %v1379_v49  ;;  %v165_v37 = vmul.f32 2.0, %v125_v57 }
  0x80   :  { %767 = vtanh.f32 %v398_v0  ;;  %v760_v15 = vpop.eup %759  ;;  %v513_v4 = vadd.f32 1.0, %v758_v31  ;;  %v320_v33 = vmul.f32 %v1361_v17, %v280_v29  ;;  %v321_v34 = vmul.f32 %v1363_v20, %v281_v30 }
  0x81   :  { %v762_v36 = vpop.eup %761  ;;  %v514_v39 = vadd.f32 1.0, %v760_v15  ;;  %v399_v40 = vmul.f32 0.7978846, %v359_v11  ;;  %v322_v41 = vmul.f32 %v1367_v5, %v282_v32  ;;  %v283_v38 = vmul.f32 %v1379_v49, %v243_v35 }
  0x82   :  { %v764_v43 = vpop.eup %763  ;;  %v553_v45 = vmul.f32 %v513_v4, %v433_v1  ;;  %v515_v46 = vadd.f32 1.0, %v762_v36  ;;  %v360_v48 = vadd.f32 %v1361_v17, %v320_v33  ;;  %v361_v53 = vadd.f32 %v1363_v20, %v321_v34 }
  0x83   :  { %v554_v54 = vmul.f32 %v514_v39, %v434_v10  ;;  %v516_v55 = vadd.f32 1.0, %v764_v43  ;;  %769 = vtanh.f32 %v399_v40  ;;  %v362_v44 = vadd.f32 %v1367_v5, %v322_v41  ;;  %v766_v56 = vpop.eup %765 }
  0x84   :  { %594 = vst.msk [vmem:[%s1530_s7 + $0xb8] sm:$0xff] %vm570_vm4, %v553_v45  ;;  %v555_v51 = vmul.f32 %v515_v46, %v435_v13  ;;  %v400_v60 = vmul.f32 0.7978846, %v360_v48  ;;  %v401_v61 = vmul.f32 0.7978846, %v361_v53  ;;  %v517_v7 = vadd.f32 1.0, %v766_v56 }
  0x85   :  { %595 = vst.msk [vmem:[%s1530_s7 + $0xc0] sm:$0xff] %vm570_vm4, %v554_v54  ;;  %v556_v6 = vmul.f32 %v516_v55, %v436_v25  ;;  %v402_v47 = vmul.f32 0.7978846, %v362_v44  ;;  %v244_v52 = vmul.f32 0.044715, %v1386_v19  ;;  %v323_v8 = vmul.f32 %v1379_v49, %v283_v38 }
  0x86   :  { %596 = vst.msk [vmem:[%s1530_s7 + $0xc8] sm:$0xff] %vm570_vm4, %v555_v51  ;;  %771 = vtanh.f32 %v400_v60  ;;  %v1413_v50 = vadd.f32 -1.0, %v165_v37  ;;  %v557_v59 = vmul.f32 %v517_v7, %v437_v28  ;;  %v166_v1 = vmul.f32 2.0, %v126_v63 }
  0x87   :  { %597 = vst.msk [vmem:[%s1530_s7 + $0xd0] sm:$0xff] %vm570_vm4, %v556_v6  ;;  %773 = vtanh.f32 %v401_v61  ;;  %v284_v14 = vmul.f32 %v1386_v19, %v244_v52  ;;  %v438_v62 = vmul.f32 0.5, %v1315_v42  ;;  %v363_v18 = vadd.f32 %v1379_v49, %v323_v8 }
  0x88   :  { %775 = vtanh.f32 %v402_v47  ;;  %v245_v3 = vmul.f32 0.044715, %v1413_v50  ;;  %598 = vst.msk [vmem:[%s1530_s7 + $0xd8] sm:$0xff] %vm570_vm4, %v557_v59  ;;  %v1437_v23 = vadd.f32 -1.0, %v166_v1  ;;  %v167_v42 = vmul.f32 2.0, %v127_v12 }
  0x89   :  { %v324_v2 = vmul.f32 %v1386_v19, %v284_v14  ;;  %v168_v10 = vmul.f32 2.0, %v128_v58  ;;  %v439_v16 = vmul.f32 0.5, %v1342_v9  ;;  %v403_v24 = vmul.f32 0.7978846, %v363_v18 }
  0x8a   :  { %v768_v22 = vpop.eup %767  ;;  %v285_v25 = vmul.f32 %v1413_v50, %v245_v3  ;;  %v246_v26 = vmul.f32 0.044715, %v1437_v23  ;;  %v1443_v27 = vadd.f32 -1.0, %v167_v42  ;;  %v169_v28 = vmul.f32 2.0, %v129_v21 }
  0x8b   :  { %v518_v13 = vadd.f32 1.0, %v768_v22  ;;  %v364_v0 = vadd.f32 %v1386_v19, %v324_v2  ;;  %777 = vtanh.f32 %v403_v24  ;;  %v1446_v57 = vadd.f32 -1.0, %v168_v10 }
  0x8c   :  { %v325_v30 = vmul.f32 %v1413_v50, %v285_v25  ;;  %v440_v11 = vmul.f32 0.5, %v1361_v17  ;;  %v286_v32 = vmul.f32 %v1437_v23, %v246_v26  ;;  %v247_v15 = vmul.f32 0.044715, %v1443_v27 }
  0x8d   :  { %v558_v29 = vmul.f32 %v518_v13, %v438_v62  ;;  %v770_v31 = vpop.eup %769  ;;  %v404_v9 = vmul.f32 0.7978846, %v364_v0  ;;  %v441_v33 = vmul.f32 0.5, %v1363_v20  ;;  %v248_v35 = vmul.f32 0.044715, %v1446_v57 }
  0x8e   :  { %v519_v4 = vadd.f32 1.0, %v770_v31  ;;  %v365_v34 = vadd.f32 %v1413_v50, %v325_v30  ;;  %v326_v17 = vmul.f32 %v1437_v23, %v286_v32  ;;  %v287_v36 = vmul.f32 %v1443_v27, %v247_v15 }
  0x8f   :  { %599 = vst.msk [vmem:[%s1530_s7 + $0xe0] sm:$0xff] %vm570_vm4, %v558_v29  ;;  %779 = vtanh.f32 %v404_v9  ;;  %v1460_v39 = vadd.f32 -1.0, %v169_v28  ;;  %v442_v37 = vmul.f32 0.5, %v1367_v5  ;;  %v288_v45 = vmul.f32 %v1446_v57, %v248_v35 }
  0x90   :  { %v772_v40 = vpop.eup %771  ;;  %v559_v41 = vmul.f32 %v519_v4, %v439_v16  ;;  %v405_v43 = vmul.f32 0.7978846, %v365_v34  ;;  %v366_v48 = vadd.f32 %v1437_v23, %v326_v17  ;;  %v327_v53 = vmul.f32 %v1443_v27, %v287_v36 }
  0x91   :  { %v774_v46 = vpop.eup %773  ;;  %v520_v20 = vadd.f32 1.0, %v772_v40  ;;  %v249_v54 = vmul.f32 0.044715, %v1460_v39  ;;  %v328_v5 = vmul.f32 %v1446_v57, %v288_v45  ;;  %v443_v47 = vmul.f32 0.5, %v1379_v49 }
  0x92   :  { %v776_v55 = vpop.eup %775  ;;  %600 = vst.msk [vmem:[%s1530_s7 + $0xe8] sm:$0xff] %vm570_vm4, %v559_v41  ;;  %v521_v44 = vadd.f32 1.0, %v774_v46  ;;  %781 = vtanh.f32 %v405_v43  ;;  %v406_v60 = vmul.f32 0.7978846, %v366_v48  ;;  %v367_v61 = vadd.f32 %v1443_v27, %v327_v53 }
  0x93   :  { %v560_v56 = vmul.f32 %v520_v20, %v440_v11  ;;  %v522_v51 = vadd.f32 1.0, %v776_v55  ;;  %v368_v63 = vadd.f32 %v1446_v57, %v328_v5  ;;  %v289_v6 = vmul.f32 %v1460_v39, %v249_v54 }
  0x94   :  { %v561_v38 = vmul.f32 %v521_v44, %v441_v33  ;;  %783 = vtanh.f32 %v406_v60  ;;  %v407_v52 = vmul.f32 0.7978846, %v367_v61  ;;  %v444_v49 = vmul.f32 0.5, %v1386_v19 }
  0x95   :  { %601 = vst.msk [vmem:[%s1530_s7 + $0xf0] sm:$0xff] %vm570_vm4, %v560_v56  ;;  %v562_v7 = vmul.f32 %v522_v51, %v442_v37  ;;  %v778_v8 = vpop.eup %777  ;;  %v408_v12 = vmul.f32 0.7978846, %v368_v63  ;;  %v329_v58 = vmul.f32 %v1460_v39, %v289_v6  ;;  %v445_v21 = vmul.f32 0.5, %v1413_v50 }
  0x96   :  { %602 = vst.msk [vmem:[%s1530_s7 + $0xf8] sm:$0xff] %vm570_vm4, %v561_v38  ;;  %v523_v59 = vadd.f32 1.0, %v778_v8  ;;  %785 = vtanh.f32 %v407_v52  ;;  %v446_v19 = vmul.f32 0.5, %v1437_v23  ;;  %v447_v24 = vmul.f32 0.5, %v1443_v27 }
  0x97   :  { %603 = vst.msk [vmem:[%s1530_s7 + $0x100] sm:$0xff] %vm570_vm4, %v562_v7  ;;  %787 = vtanh.f32 %v408_v12  ;;  %v369_v14 = vadd.f32 %v1460_v39, %v329_v58  ;;  %v448_v50 = vmul.f32 0.5, %v1446_v57  ;;  %v449_v27 = vmul.f32 0.5, %v1460_v39 }
  0x98   :  { %v563_v62 = vmul.f32 %v523_v59, %v443_v47  ;;  %vm610_vm5 = vcmask 83968  }
  0x99   :  { %v780_v1 = vpop.eup %779  ;;  %v409_v3 = vmul.f32 0.7978846, %v369_v14 }
  0x9a   :  { %v524_v18 = vadd.f32 1.0, %v780_v1  ;;  %604 = vst.msk [vmem:[%s1530_s7 + $0x108] sm:$0xff] %vm570_vm4, %v563_v62 }
  0x9b   :  { %789 = vtanh.f32 %v409_v3 }
  0x9c   :  { %v782_v22 = vpop.eup %781  ;;  %v564_v2 = vmul.f32 %v524_v18, %v444_v49 }
  0x9d   :  { %v525_v42 = vadd.f32 1.0, %v782_v22 }
  0x9e   :  { %605 = vst.msk [vmem:[%s1530_s7 + $0x110] sm:$0xff] %vm570_vm4, %v564_v2  ;;  %v784_v10 = vpop.eup %783 }
  0x9f   :  { %v565_v13 = vmul.f32 %v525_v42, %v445_v21  ;;  %v526_v16 = vadd.f32 1.0, %v784_v10 }
  0xa0   :  { %v786_v25 = vpop.eup %785 }
  0xa1   :  { %606 = vst.msk [vmem:[%s1530_s7 + $0x118] sm:$0xff] %vm570_vm4, %v565_v13  ;;  %v788_v0 = vpop.eup %787  ;;  %v566_v26 = vmul.f32 %v526_v16, %v446_v19  ;;  %v527_v28 = vadd.f32 1.0, %v786_v25 }
  0xa2   :  { %v528_v29 = vadd.f32 1.0, %v788_v0 }
  0xa3   :  { %607 = vst.msk [vmem:[%s1530_s7 + $0x120] sm:$0xff] %vm570_vm4, %v566_v26  ;;  %v567_v23 = vmul.f32 %v527_v28, %v447_v24 }
  0xa4   :  { %v568_v30 = vmul.f32 %v528_v29, %v448_v50 }
  0xa5   :  { %v790_v31 = vpop.eup %789  ;;  %608 = vst.msk [vmem:[%s1530_s7 + $0x128] sm:$0xff] %vm570_vm4, %v567_v23 }
  0xa6   :  { %609 = vst.msk [vmem:[%s1530_s7 + $0x130] sm:$0xff] %vm570_vm4, %v568_v30  ;;  %v529_v57 = vadd.f32 1.0, %v790_v31 }
  0xa8   :  { %v569_v11 = vmul.f32 %v529_v57, %v449_v27 }
  0xaa   :  { %611 = vst.msk [vmem:[%s1530_s7 + $0x138] sm:$0x7] %vm610_vm5, %v569_v11 }
  0xab   :  { %835 = dma.done.wait [#allocation3], 16  }
  0xac   :  { %836 = vsyncadd [#allocation3], 4294967280 }
  0xad   :  { %837 = dma.done.wait [#allocation5], 32  }
  0xae   :  { %838 = vsyncadd [#allocation5], 4294967264 }
  0xaf   :  { %646 = vsyncpa [#allocation3], 1 }
  0xb0   :  { %647 = vsyncpa [#allocation5], 1 }

</bundles_post_ra>
